<compile_context>
chip_gen: v7x
topology: tpu7x:2x2x1
jax: 0.10.0
libtpu: 0.0.40
codegen_flags: <defaults>
</compile_context>

<pallas_src>
import jax
import jax.numpy as jnp
from jax.experimental import pallas as pl
from jax.experimental.pallas import tpu as pltpu


def _pooler_kernel(x_ref, wt_ref, b_ref, o_ref):
    # x_ref: [TB, H_in]   wt_ref: [H_in, H_out]   b_ref: [1, H_out] (f32)
    # o_ref: [TB, H_out]
    x = x_ref[...].astype(wt_ref.dtype)              # no-op when dtypes already match
    y = jax.lax.dot_general(
        x, wt_ref[...],
        dimension_numbers=(((1,), (0,)), ((), ())),   # plain x @ W (weight pre-transposed)
        preferred_element_type=jnp.float32,           # f32 accumulation on the MXU
    )
    o_ref[...] = jnp.tanh(y + b_ref[...]).astype(o_ref.dtype)


def prepare_pooler_params(weight, bias, mxu_dtype=None):
    """One-time parameter prep (do at load time, NOT per forward call).

    weight: [H_out, H_in] (PyTorch nn.Linear layout), bias: [H_out].
    Returns (weight_t [H_in, H_out], bias_f32 [1, H_out]).
    Set mxu_dtype=jnp.bfloat16 on v6e/v7x to halve weight HBM traffic (opt-in
    precision tradeoff; accumulation/epilogue remain f32).
    """
    w_t = weight.T
    if mxu_dtype is not None:
        w_t = w_t.astype(mxu_dtype)
    return w_t, bias.astype(jnp.float32).reshape(1, -1)


def super_bert_pooler(hidden_states, weight_t, bias_f32, *, batch_tile=512):
    """hidden_states: [B, S, H]; weight_t: [H_in, H_out]; bias_f32: [1, H_out].

    Returns tanh(hidden_states[:, 0] @ weight_t + bias), shape [B, H_out].
    """
    B, S, H = hidden_states.shape
    H_in, H_out = weight_t.shape
    assert H_in == H and bias_f32.shape == (1, H_out)

    # Batch tile: keep blocks (8,128)-legal and never collapse to a single
    # grid step when the batch is big enough to split (v7x megacore + pipeline
    # overlap; larger default tile than before for fewer per-step overheads).
    if B >= 16:
        TB = min(batch_tile, ((pl.cdiv(B, 2) + 7) // 8) * 8)
    else:
        TB = B
    grid = (pl.cdiv(B, TB),)

    # Fused first-token slice: view x as [B, S*H]; the (TB, H) block at
    # column-block 0 is exactly token 0 of every row.
    fuse_slice = (S == 1) or (H % 128 == 0)
    if fuse_slice:
        x_in = hidden_states.reshape(B, S * H)
    else:
        # TODO(synk): H not a multiple of 128 -> a (TB, H) block over [B, S*H]
        # would violate the (8,128) tiling rule; slice via XLA instead.
        x_in = hidden_states[:, 0, :]
    x_spec = pl.BlockSpec((TB, H), lambda i: (i, 0))

    in_itemsize = jnp.dtype(hidden_states.dtype).itemsize
    w_itemsize = jnp.dtype(weight_t.dtype).itemsize

    # VMEM budget: double-buffered x/out tiles + single-buffered weight/bias,
    # with 2x headroom (critical on v5e's 16 MiB scoped default / v7x's 64 MiB).
    vmem_needed = (2 * TB * H * in_itemsize
                   + 2 * TB * H_out * in_itemsize
                   + H * H_out * w_itemsize
                   + 2 * H_out * 4)
    vmem_limit = int(min(64 * 2 ** 20, max(32 * 2 ** 20, 2 * vmem_needed)))

    return pl.pallas_call(
        _pooler_kernel,
        out_shape=jax.ShapeDtypeStruct((B, H_out), hidden_states.dtype),
        grid_spec=pl.GridSpec(
            grid=grid,
            in_specs=[
                x_spec,                                           # activation tile per step
                pl.BlockSpec((H, H_out), lambda i: (0, 0),
                             pipeline_mode=pl.Buffered(1)),       # weight resident, single buffer
                pl.BlockSpec((1, H_out), lambda i: (0, 0),
                             pipeline_mode=pl.Buffered(1)),       # bias resident, single buffer
            ],
            out_specs=pl.BlockSpec((TB, H_out), lambda i: (i, 0)),
        ),
        compiler_params=pltpu.CompilerParams(
            dimension_semantics=("parallel",),                    # megacore sharding on v7x
            vmem_limit_bytes=vmem_limit,
        ),
        cost_estimate=pl.CostEstimate(
            flops=2 * B * H * H_out,
            transcendentals=B * H_out,                            # tanh per output element
            bytes_accessed=(B * H * in_itemsize                   # first-token reads only
                            + H * H_out * w_itemsize              # weight read once
                            + H_out * 4                           # bias
                            + B * H_out * in_itemsize),           # output writeback
        ),
    )(x_in, weight_t, bias_f32)


def super_bert_pooler_ref(hidden_states, weight, bias):
    first_token = hidden_states[:, 0, :]
    return jnp.tanh(first_token @ weight.T + bias)


if __name__ == "__main__":
    # Small shapes consistent with the forward pass (lane-aligned hidden size,
    # batch big enough to exercise the 2-step "parallel" grid).
    B, S, H = 16, 8, 128

    key = jax.random.PRNGKey(0)
    k_x, k_w, k_b = jax.random.split(key, 3)

    hidden_states = jax.random.normal(k_x, (B, S, H), dtype=jnp.float32)
    weight = jax.random.normal(k_w, (H, H), dtype=jnp.float32) * 0.02   # PyTorch [H_out, H_in]
    bias = jax.random.normal(k_b, (H,), dtype=jnp.float32) * 0.02

    # One-time parameter prep: transpose (and optional cast) hoisted out of
    # the per-call / jitted path.
    w_t, b_f32 = prepare_pooler_params(weight, bias)

    pooler = jax.jit(super_bert_pooler)
    out = jax.block_until_ready(pooler(hidden_states, w_t, b_f32))

    ref = super_bert_pooler_ref(hidden_states, weight, bias)
    assert out.shape == (B, H)
    assert jnp.allclose(out, ref, atol=1e-4, rtol=1e-4), float(jnp.max(jnp.abs(out - ref)))

    print("KERNEL_OK")
</pallas_src>

<mosaic_0001>
module attributes {stable_mosaic.version = 11 : i64} {
  func.func @_pooler_kernel(%arg0: i32, %arg1: memref<8x128xf32, #tpu.memory_space<vmem>>, %arg2: memref<128x128xf32, #tpu.memory_space<vmem>>, %arg3: memref<1x128xf32, #tpu.memory_space<vmem>>, %arg4: memref<8x128xf32, #tpu.memory_space<vmem>>) attributes {dimension_semantics = [#tpu.dimension_semantics<parallel>], iteration_bounds = array<i64: 2>, scalar_prefetch = 0 : i64, scratch_operands = 0 : i64, tpu.core_type = #tpu.core_type<tc>, window_params = [{transform_indices = @transform_0, window_bounds = array<i64: 8, 128>}, {pipeline_mode = #tpu.pipeline_mode<synchronous>, transform_indices = @transform_1, window_bounds = array<i64: 128, 128>}, {pipeline_mode = #tpu.pipeline_mode<synchronous>, transform_indices = @transform_2, window_bounds = array<i64: 1, 128>}, {transform_indices = @transform_3, window_bounds = array<i64: 8, 128>}]} {
    %c0 = arith.constant 0 : index
    %c0_0 = arith.constant 0 : index
    %0 = vector.load %arg1[%c0, %c0_0] : memref<8x128xf32, #tpu.memory_space<vmem>>, vector<8x128xf32>
    %c0_1 = arith.constant 0 : index
    %c0_2 = arith.constant 0 : index
    %1 = vector.load %arg2[%c0_1, %c0_2] : memref<128x128xf32, #tpu.memory_space<vmem>>, vector<128x128xf32>
    %cst = arith.constant dense<0.000000e+00> : vector<8x128xf32>
    %2 = tpu.matmul %0, %1, %cst {dimension_numbers = #tpu.dot_dimension_numbers<[1], [0], [0], [1], [0, 0, 1, 1], [], []>} : vector<8x128xf32>, vector<128x128xf32>, vector<8x128xf32> -> vector<8x128xf32>
    %c0_3 = arith.constant 0 : index
    %c0_4 = arith.constant 0 : index
    %3 = vector.load %arg3[%c0_3, %c0_4] : memref<1x128xf32, #tpu.memory_space<vmem>>, vector<1x128xf32>
    %4 = vector.broadcast %3 : vector<1x128xf32> to vector<8x128xf32>
    %5 = arith.addf %2, %4 : vector<8x128xf32>
    %6 = math.tanh %5 : vector<8x128xf32>
    %c0_5 = arith.constant 0 : index
    %c0_6 = arith.constant 0 : index
    %7 = vector.load %arg4[%c0_5, %c0_6] : memref<8x128xf32, #tpu.memory_space<vmem>>, vector<8x128xf32>
    tpu.vector_store %arg4[%c0_5, %c0_6], %6 {strides = array<i32>} : memref<8x128xf32, #tpu.memory_space<vmem>>, vector<8x128xf32>,
    return
  }
  func.func @transform_0(%arg0: i32) -> (i32, i32) {
    %c0_i32 = arith.constant 0 : i32
    %c0_i32_0 = arith.constant 0 : i32
    return %arg0, %c0_i32 : i32, i32
  }
  func.func @transform_1(%arg0: i32) -> (i32, i32) {
    %c0_i32 = arith.constant 0 : i32
    %c0_i32_0 = arith.constant 0 : i32
    %c0_i32_1 = arith.constant 0 : i32
    return %c0_i32, %c0_i32_0 : i32, i32
  }
  func.func @transform_2(%arg0: i32) -> (i32, i32) {
    %c0_i32 = arith.constant 0 : i32
    %c0_i32_0 = arith.constant 0 : i32
    %c0_i32_1 = arith.constant 0 : i32
    return %c0_i32, %c0_i32_0 : i32, i32
  }
  func.func @transform_3(%arg0: i32) -> (i32, i32) {
    %c0_i32 = arith.constant 0 : i32
    %c0_i32_0 = arith.constant 0 : i32
    return %arg0, %c0_i32 : i32, i32
  }
}

</mosaic_0001>

<bundles_post_ra>
// kernel: super_bert_pooler.1
= control target key start
LH: loop header
LB: loop body
LE: loop exit
PB: predicated region body
PF: predicated region fallthrough
CT: control target
= control target key end

     0   :  { %8 = vsyncpa [#allocation3], 0  ;;  %s710_s0 = inlined_call_operand.vmem [shape: f32[16,1024], index: 0, kind: input, shape index: {}]   ;;  %s711_s1 = inlined_call_operand.vmem [shape: f32[128,128], index: 1, kind: input, shape index: {}]   ;;  %s712_s2 = inlined_call_operand.vmem [shape: f32[1,128], index: 2, kind: input, shape index: {}]   ;;  %s713_s3 = inlined_call_operand.hbm [shape: f32[16,128], index: 3, kind: output, shape index: {}]  }
   0x1   :  { %10 = vsyncpa [#allocation3 + $0x1], 0  ;;  %s559_s12 = smov 0   ;;  %s561_s13 = smov 0  }
   0x2   :  { %s563_s14 = smov 0   ;;  %s565_s15 = smov 0  }
   0x3 LB: > { %s580_s16 = sadd.s32 4294967295, %s533_s15   ;;  %s338_s17 = sadd.s32 4294967294, %s533_s15   ;;  %s533_s15 = sphi %s565_s15, %s719_s15   ;;  %s529_s14 = sphi %s563_s14, %s718_s14   ;;  %s525_s13 = sphi %s561_s13, %s717_s13   ;;  %s521_s12 = sphi %s559_s12, %s716_s12  }
   0x4   : > { %s584_s18 = sadd.s32 1, %s533_s15   ;;  %s91_s19 = sadd.s32 1, %s529_s14 }
   0x5   : > { %s88_s20 = ssub.s32 %s533_s15, %s584_s18  ;;  %p101_p0 = scmp.ne.s32.totalorder %s529_s14, %s525_s13 }
   0x6   : > { %p89_p1 = scmp.eq.s32.totalorder %s88_s20, 0  ;;  %p102_p2 = scmp.eq.s32.totalorder %s580_s16, 1 }
   0x7   : > { %p107_p3 = scmp.ne.s32.totalorder %s525_s13, %s521_s12  ;;  %p108_p4 = scmp.eq.s32.totalorder %s338_s17, 1 }
   0x8   : > { %s595_s21 = scalar_select %p89_p1, %s529_s14, %s91_s19  }
   0x9   : > { %p597_p5 = por %p102_p2, %p101_p0  ;;  %p601_p6 = por %p108_p4, %p107_p3 }
   0xa   : > { %p341_p7 = scmp.ge.s32.totalorder %s533_s15, 1  ;;  %p140_p8 = scmp.lt.s32.totalorder %s533_s15, 3 }
   0xc   : > { %p141_p9 = pnand %p341_p7, %p140_p8 }
   0xd   : > { %v170_v0 = vld [vmem:[%s711_s1] sm:$0xff] (!%p141_p9)  ;;  %v171_v1 = vld [vmem:[%s711_s1 + $0x8] sm:$0xff] (!%p141_p9)  ;;  %v172_v2 = vld [vmem:[%s711_s1 + $0x10] sm:$0xff] (!%p141_p9)  ;;  %v535_v3 = vmov (!%p141_p9), 0.0|0.0   ;;  %vm536_vm0 = vmmov (!%p141_p9), 0   ;;  %v537_v6 = vmov (!%p141_p9), 0.0  }
   0xe   : > { %144 = sbr.rel (%p141_p9) target bundleno = 286 (0x11e), region = 32  ;;  %403 = vmatprep.subr.bf16.mxu0 (!%p141_p9), %v535_v3  ;;  %v404_v4 = vpack.c.bf16 (!%p141_p9), %v171_v1, %v170_v0  ;;  %v173_v5 = vld [vmem:[%s711_s1 + $0x18] sm:$0xff] (!%p141_p9)  ;;  %400 = vmatprep.mubr.msk.f32.mxu0 (!%p141_p9), %vm536_vm0, %v537_v6  ;;  %v174_v8 = vld [vmem:[%s711_s1 + $0x20] sm:$0xff] (!%p141_p9)  ;;  %v175_v9 = vld [vmem:[%s711_s1 + $0x28] sm:$0xff] (!%p141_p9)  ;;  %p164_p10 = scmp.lt.s32.totalorder (!%p141_p9), %s580_s16, 1 }
   0xf   : > { %v407_v7 = vpack.c.bf16 (!%p141_p9), %v173_v5, %v172_v2  ;;  %v410_v10 = vpack.c.bf16 (!%p141_p9), %v175_v9, %v174_v8  ;;  %v176_v11 = vld [vmem:[%s711_s1 + $0x30] sm:$0xff] (!%p141_p9)  ;;  %v177_v12 = vld [vmem:[%s711_s1 + $0x38] sm:$0xff] (!%p141_p9)  ;;  %v178_v14 = vld [vmem:[%s711_s1 + $0x40] sm:$0xff] (!%p141_p9)  ;;  %s161_s27 = sand.u32 (!%p141_p9), 1, %s525_s13   ;;  %s347_s29 = sshll.u32 (!%p141_p9), %s580_s16, 7 }
  0x10   : > { %405 = vmatpush3.bf16.msra.mxu0 (!%p141_p9), %v404_v4  ;;  %v413_v13 = vpack.c.bf16 (!%p141_p9), %v177_v12, %v176_v11  ;;  %v179_v15 = vld [vmem:[%s711_s1 + $0x48] sm:$0xff] (!%p141_p9)  ;;  %v180_v17 = vld [vmem:[%s711_s1 + $0x50] sm:$0xff] (!%p141_p9)  ;;  %v181_v18 = vld [vmem:[%s711_s1 + $0x58] sm:$0xff] (!%p141_p9)  ;;  %s342_s28 = sshll.u32 (!%p141_p9), %s161_s27, 3  ;;  %s266_s8 = scalar_lea.sflag (!%p141_p9), [#allocation3], %s161_s27 }
  0x11   : > { %406 = vmatprep.subr.bf16.mxu0 (!%p141_p9), %v535_v3  ;;  %v416_v16 = vpack.c.bf16 (!%p141_p9), %v179_v15, %v178_v14  ;;  %v419_v19 = vpack.c.bf16 (!%p141_p9), %v181_v18, %v180_v17  ;;  %v182_v20 = vld [vmem:[%s711_s1 + $0x60] sm:$0xff] (!%p141_p9)  ;;  %v183_v21 = vld [vmem:[%s711_s1 + $0x68] sm:$0xff] (!%p141_p9)  ;;  %v184_v23 = vld [vmem:[%s711_s1 + $0x70] sm:$0xff] (!%p141_p9)  ;;  %s163_s30 = scalar_lea.vmem (!%p141_p9), [#allocation2], %s342_s28 }
  0x12   : > { %v422_v22 = vpack.c.bf16 (!%p141_p9), %v183_v21, %v182_v20  ;;  %v185_v24 = vld [vmem:[%s711_s1 + $0x78] sm:$0xff] (!%p141_p9)  ;;  %v345_v27 = vld [vmem:[%s712_s2] ss:$0 sm:$0xff] (!%p141_p9)  ;;  %s279_s4 = sshll.u32 (!%p141_p9), %s163_s30, 4  ;;  %s670_s4 = int_to_ptr.vmem [resolvable:$true] %s279_s4 }
  0x13   : > { %v425_v25 = vpack.c.bf16 (!%p141_p9), %v185_v24, %v184_v23  ;;  %s471_s9 = scalar_lea.vmem (!%p141_p9), %s670_s4, 128 }
  0x14   : > { %408 = vmatpush3.bf16.msra.mxu0 (!%p141_p9), %v407_v7  ;;  %p472_p11 = scmp.ne.s32.totalorder (!%p141_p9), %s670_s4, %s471_s9 }
  0x15   : > { %409 = vmatprep.subr.bf16.mxu0 %v535_v3  ;;  %s165_s7 = scalar_select %p164_p10, %s580_s16, 1 }
  0x16   : > { %p473_p12 = pnand %p472_p11, %p597_p5  ;;  %s538_s16 = smov [#allocation2]  }
  0x17   : > { %s350_s17 = sshll.u32 %s165_s7, 6  ;;  %s668_s7 = scalar_lea.hbm %s713_s3, %s347_s29 }
  0x18   : > { %411 = vmatpush3.bf16.msra.mxu0 %v410_v10  ;;  %s168_s24 = scalar_lea.vmem %s710_s0, %s350_s17  ;;  %p474_p13 = pneg %p473_p12 }
  0x19   : > { %412 = vmatprep.subr.bf16.mxu0 %v535_v3  ;;  %v169_v26 = vld [vmem:[%s168_s24] sm:$0xff]  ;;  %s475_s10 = sshll.u32 %s538_s16, 4  ;;  %s476_s10 = int_to_ptr.vmem [resolvable:$false] %s475_s10 }
  0x1a   : > { %s477_s11 = scalar_lea.vmem %s476_s10, 256  ;;  %p478_p0 = scmp.lt.s32.totalorder %s670_s4, %s476_s10 }
  0x1b   : > { %p479_p1 = scmp.lt.s32.totalorder %s477_s11, %s471_s9 }
  0x1c   : > { %414 = vmatpush3.bf16.msra.mxu0 %v413_v13 }
  0x1d   : > { %415 = vmatprep.subr.bf16.mxu0 %v535_v3  ;;  %p480_p2 = por %p479_p1, %p478_p0 }
  0x1f   : > { %p481_p3 = pnand %p480_p2, %p474_p13 }
  0x20   : > { %417 = vmatpush3.bf16.msra.mxu0 %v416_v16 }
  0x21   : > { %418 = vmatprep.subr.bf16.mxu0 %v535_v3 }
  0x24   : > { %420 = vmatpush3.bf16.msra.mxu0 %v419_v19 }
  0x25   : > { %421 = vmatprep.subr.bf16.mxu0 %v535_v3 }
  0x28   : > { %423 = vmatpush3.bf16.msra.mxu0 %v422_v22 }
  0x29   : > { %424 = vmatprep.subr.bf16.mxu0 %v535_v3 }
  0x2c   : > { %426 = vmatpush3.bf16.msra.mxu0 %v425_v25 }
  0x2f   : > { %401 = vmatmul.mubr.f32.vlgmr.msra.gmra.mrb[0].mxu0 %v169_v26 }
 0x102   : > { %v259_v28 = vpop.f32.mrb[0].mxu0 }
 0x103   : > { %v260_v29 = vadd.f32 %v345_v27, %v259_v28  ;;  %v402_v30 = vpop.f32.mrb[1].mxu0 }
 0x105   : > { %469 = vtanh.f32 %v260_v29 }
 0x10f   : > { %v470_v31 = vpop.eup %469 }
 0x110   : > { %264 = vst [vmem:[%s163_s30] sm:$0xff] %v470_v31 }
 0x111   : > { %484 = shalt.err (!%p481_p3)
}
 0x112   : > { %s485_s17 = scalar_lea.hbm %s668_s7, 128  ;;  %s489_s24 = scalar_lea.hbm %s713_s3, 256 }
 0x113   : > { %p486_p4 = scmp.ne.s32.totalorder %s668_s7, %s485_s17  ;;  %p490_p9 = scmp.lt.u32.totalorder %s668_s7, %s713_s3 }
 0x114   : > { %p491_p10 = scmp.lt.u32.totalorder %s489_s24, %s485_s17  ;;  %p493_p12 = scmp.lt.u32.totalorder %s485_s17, %s668_s7 }
 0x115   : > { %p487_p7 = pnand %p486_p4, %p597_p5 }
 0x116   : > { %p492_p11 = por %p491_p10, %p490_p9 }
 0x117   : > { %p488_p8 = pneg %p487_p7 }
 0x118   : > { %p494_p13 = por %p493_p12, %p492_p11 }
 0x11a   : > { %p495_p0 = pnand %p494_p13, %p488_p8 }
 0x11c   : > { %498 = shalt.err (!%p495_p0)
}
 0x11d   : > { %427 = dma.vmem_to_hbm [thread:$0]  (%p597_p5), %s670_s4, 128, %s668_s7, %s266_s8  }
 0x11e PF: > { %p433_p1 = scmp.ge.s32.totalorder %s533_s15, 2  ;;  %s291_s27 = sand.u32 1, %s521_s12  }
 0x11f   : > { %s292_s28 = scalar_lea.sflag [#allocation3], %s291_s27 }
 0x120   : > { %p430_p2 = pnand %p433_p1, %p601_p6 }
 0x122   : > { %516 = dma.done.wait (!%p430_p2), %s292_s28, 128  }
 0x123   : > { %518 = vsyncadd (!%p430_p2), %s292_s28, 4294967168  ;;  %p13_p3 = scmp.ge.s32.totalorder %s584_s18, 4   ;;  %s716_s12 = smov %s525_s13 }
 0x124   : > { %s717_s13 = smov %s529_s14  ;;  %s718_s14 = smov %s595_s21 }
 0x125   : > { %s719_s15 = smov %s584_s18  ;;  %15 = sbr.rel (!%p13_p3) target bundleno = 3 (0x3), region = 67 }
 0x12c   :  { %297 = vsyncpa [#allocation3], 1 }
 0x12d   :  { %299 = vsyncpa [#allocation3 + $0x1], 1 }

</bundles_post_ra>
